<compile_context>
chip_gen: v7x
topology: tpu7x:2x2x1
jax: 0.10.0
libtpu: 0.0.40
codegen_flags: <defaults>
</compile_context>

<pallas_src>
import functools
import math

import jax
import jax.numpy as jnp
from jax import lax
from jax.experimental import pallas as pl
from jax.experimental.pallas import tpu as pltpu


def _attention_kernel(q_ref, kv_ref, o_ref, m_sc, l_sc, acc_sc, *,
                      block_b, block_n, n_keys, scale, mask_tail):
    """Flash-style attention, one (batch-block, kv-tile) per grid step.

    q_ref  : (BB, T, C)   text queries              (compute dtype, e.g. bf16)
    kv_ref : (BB, C, BN)  image keys == values       (compute dtype, NCHW layout)
    o_ref  : (BB, T, C)   attended output            (original dtype)
    m_sc   : (BB, T, 1)   f32 running max
    l_sc   : (BB, T, 1)   f32 running denominator
    acc_sc : (BB, T, C)   f32 running numerator
    """
    kv_step = pl.program_id(1)

    @pl.when(kv_step == 0)
    def _():
        m_sc[...] = jnp.full_like(m_sc, -jnp.inf)
        l_sc[...] = jnp.zeros_like(l_sc)
        acc_sc[...] = jnp.zeros_like(acc_sc)

    T = q_ref.shape[1]
    C = q_ref.shape[2]

    if mask_tail:
        # Only generated when N % block_n != 0 (static). Cheap VPU work on a
        # mem-bound kernel; identity on all but the last kv tile.
        col0 = kv_step * block_n
        s_mask = (col0 + lax.broadcasted_iota(jnp.int32, (T, block_n), 1)) < n_keys
        kv_mask = (col0 + lax.broadcasted_iota(jnp.int32, (C, block_n), 1)) < n_keys

    # Statically-unrolled loop over the batch elements in this block: each
    # iteration is a pair of plain 2-D MXU matmuls (no batch-1 batched einsum).
    for i in range(block_b):
        q = q_ref[i]                   # (T, C)    compute dtype
        kv = kv_ref[i]                 # (C, BN)   compute dtype
        if mask_tail:
            # Zero padded key columns so garbage (possibly NaN/Inf) padding can
            # never leak through 0 * NaN in the pv matmul below.
            kv = jnp.where(kv_mask, kv, jnp.zeros_like(kv))

        # scores (T, BN): canonical NN matmul, f32 accumulation on the MXU.
        s = lax.dot_general(q, kv, (((1,), (0,)), ((), ())),
                            preferred_element_type=jnp.float32)
        # Scale the f32 scores (not the low-precision q) by 1/sqrt(C).
        s = s * scale
        if mask_tail:
            s = jnp.where(s_mask, s, -jnp.inf)   # -> exp() == 0 for padded keys

        m_prev = m_sc[i]                                       # (T, 1)
        m_new = jnp.maximum(m_prev, jnp.max(s, axis=-1, keepdims=True))
        alpha = jnp.exp(m_prev - m_new)                        # (T, 1)
        p = jnp.exp(s - m_new)                                 # (T, BN) f32

        l_sc[i] = alpha * l_sc[i] + jnp.sum(p, axis=-1, keepdims=True)

        # p @ kv^T: NT dimension_numbers (contract the lane dims) -- same
        # pattern as the reference TPU flash kernel's q @ k^T; no materialized
        # transpose of the (C, BN) kv tile. f32 accumulation.
        pv = lax.dot_general(p.astype(kv.dtype), kv,
                             (((1,), (1,)), ((), ())),
                             preferred_element_type=jnp.float32)
        acc_sc[i] = alpha * acc_sc[i] + pv
        m_sc[i] = m_new

    @pl.when(kv_step == pl.num_programs(1) - 1)
    def _():
        # EUP slot, essentially free; ~1e-3 relative error is fine here.
        inv_l = pl.reciprocal(l_sc[...], approx=True)
        o_ref[...] = (acc_sc[...] * inv_l).astype(o_ref.dtype)


def _has_two_tensorcores():
    """True if one JAX device spans 2 TensorCores (megacore v4/v5p, v7x)."""
    try:
        kind = jax.devices()[0].device_kind.lower()
    except Exception:
        return True  # conservative: keep the batch grid axis splittable
    for s in ("v2", "v3", "v5 lite", "v5e", "v5litepod", "v6 lite", "v6e"):
        if s in kind:
            return False
    return True


def _pick_block_b(B, two_cores, max_bb=4):
    """Batch elements per grid step. On single-TC chips just take the largest
    small divisor (amortize per-step overhead); on 2-TC devices keep
    grid[0] >= 2 so the 'parallel' batch axis can shard across both cores."""
    best = 1
    for d in range(1, min(B, max_bb) + 1):
        if B % d == 0 and (not two_cores or B // d >= 2):
            best = d
    return best


def _pick_block_n(N, C, itemsize, max_bn=2048):
    """Key-axis tile. Full N when it fits the vreg-pressure cap; otherwise the
    largest 128-multiple tile whose kv slab stays <= ~64 KiB in the compute
    dtype (keeps kv + s + p live values well under spill territory). A ragged
    tail is handled by in-kernel lane masking (cdiv grid)."""
    cap = ((64 * 1024) // max(C * itemsize, 1)) // 128 * 128
    cap = max(128, min(max_bn, cap))
    if N <= cap:
        return N          # full key axis in one step; always a legal block
    return cap            # multiple of 128; tail tile masked if ragged


def text_image_stacked_attention(img_feats_nchw, exp_feats, *,
                                 block_b=None, block_n=None,
                                 compute_dtype=jnp.bfloat16):
    """img_feats_nchw: (B, C, H, W); exp_feats: (B, T, C) -> (B, T, C)."""
    B, C, H, W = img_feats_nchw.shape
    Bq, T, Cq = exp_feats.shape
    assert Bq == B and Cq == C, "query / key batch & channel dims must match"
    N = H * W

    # Free reshape only (no transpose -> no extra HBM pass): keys/values stay
    # in the NCHW-derived (B, C, N) layout, are cast to the (bf16) compute
    # dtype, and are passed to the kernel ONCE (k == v).
    kv = img_feats_nchw.reshape(B, C, N).astype(compute_dtype)
    q = exp_feats.astype(compute_dtype)

    c_item = jnp.dtype(compute_dtype).itemsize
    o_item = jnp.dtype(exp_feats.dtype).itemsize

    if block_b is None:
        block_b = _pick_block_b(B, _has_two_tensorcores())
    if block_n is None:
        block_n = _pick_block_n(N, C, c_item)
    assert B % block_b == 0, "block_b must divide the batch"
    assert block_n % 128 == 0 or block_n == N, \
        "block_n must be a multiple of 128 or the full key axis"

    n_kv_steps = pl.cdiv(N, block_n)
    mask_tail = (N % block_n) != 0

    kernel = functools.partial(
        _attention_kernel, block_b=block_b, block_n=block_n, n_keys=N,
        scale=1.0 / math.sqrt(C), mask_tail=mask_tail)

    # Right-size the VMEM request (double-buffered blocks + f32 scratch, with
    # generous margin). v7x has only 64 MiB physical VMEM per TensorCore.
    q_blk = block_b * T * C * c_item
    kv_blk = block_b * C * block_n * c_item
    o_blk = block_b * T * C * o_item
    scr = block_b * T * (C + 2) * 4
    vmem_limit = int(min(64 * 1024 * 1024,
                         max(16 * 1024 * 1024,
                             4 * (2 * (q_blk + kv_blk + o_blk) + scr))))

    grid = (B // block_b, n_kv_steps)
    out = pl.pallas_call(
        kernel,
        out_shape=jax.ShapeDtypeStruct((B, T, C), exp_feats.dtype),
        grid_spec=pltpu.PrefetchScalarGridSpec(
            num_scalar_prefetch=0,
            grid=grid,
            in_specs=[
                pl.BlockSpec((block_b, T, C), lambda b, n: (b, 0, 0)),        # q
                pl.BlockSpec((block_b, C, block_n), lambda b, n: (b, 0, n)),  # kv (k == v, passed once)
            ],
            out_specs=pl.BlockSpec((block_b, T, C), lambda b, n: (b, 0, 0)),
            scratch_shapes=[
                pltpu.VMEM((block_b, T, 1), jnp.float32),   # running max
                pltpu.VMEM((block_b, T, 1), jnp.float32),   # running denom
                pltpu.VMEM((block_b, T, C), jnp.float32),   # running numerator
            ],
        ),
        compiler_params=pltpu.CompilerParams(
            # kv (reduction) axis stays innermost & arbitrary: the output is
            # written only on the last kv step. Batch axis is parallel.
            dimension_semantics=("parallel", "arbitrary"),
            vmem_limit_bytes=vmem_limit,
        ),
    )(q, kv)
    return out


def _reference(img_feats_nchw, exp_feats, compute_dtype=jnp.bfloat16):
    """f32 softmax-attention reference on inputs cast to the compute dtype
    (so the comparison isolates kernel error, not bf16 input rounding)."""
    B, C, H, W = img_feats_nchw.shape
    kv = img_feats_nchw.reshape(B, C, H * W).astype(compute_dtype).astype(jnp.float32)
    q = exp_feats.astype(compute_dtype).astype(jnp.float32)
    s = jnp.einsum("btc,bcn->btn", q, kv) / math.sqrt(C)
    p = jax.nn.softmax(s, axis=-1)
    return jnp.einsum("btn,bcn->btc", p, kv).astype(exp_feats.dtype)


if __name__ == "__main__":
    key = jax.random.PRNGKey(0)
    k1, k2, k3, k4 = jax.random.split(key, 4)

    # Case 1: regular feature map (N = 256, multiple of the lane width).
    B, C, H, W, T = 4, 32, 16, 16, 8
    img_feats = jax.random.normal(k1, (B, C, H, W), dtype=jnp.float32)
    exp_feats = jax.random.normal(k2, (B, T, C), dtype=jnp.float32)

    out = jax.block_until_ready(text_image_stacked_attention(img_feats, exp_feats))
    ref = _reference(img_feats, exp_feats)
    assert out.shape == (B, T, C)
    # Tolerance covers the bf16 cast of the softmax weights before the second
    # matmul and the EUP approx-reciprocal denominator; a genuinely wrong
    # kernel would be off by O(1).
    assert jnp.allclose(out, ref, atol=1e-2, rtol=2e-2), (
        float(jnp.max(jnp.abs(out - ref))))

    # Case 2: ragged key axis (14x14 = 196) with an explicit 128-wide kv tile
    # to exercise the masked-tail (cdiv grid) path.
    B2, C2, H2, W2, T2 = 2, 32, 14, 14, 8
    img2 = jax.random.normal(k3, (B2, C2, H2, W2), dtype=jnp.float32)
    exp2 = jax.random.normal(k4, (B2, T2, C2), dtype=jnp.float32)

    out2 = jax.block_until_ready(
        text_image_stacked_attention(img2, exp2, block_n=128))
    ref2 = _reference(img2, exp2)
    assert out2.shape == (B2, T2, C2)
    assert jnp.allclose(out2, ref2, atol=1e-2, rtol=2e-2), (
        float(jnp.max(jnp.abs(out2 - ref2))))

    print("KERNEL_OK")
</pallas_src>

<mosaic_0001>
module attributes {stable_mosaic.version = 11 : i64} {
  func.func @_attention_kernel(%arg0: i32, %arg1: i32, %arg2: memref<2x8x32xbf16, #tpu.memory_space<vmem>>, %arg3: memref<2x32x256xbf16, #tpu.memory_space<vmem>>, %arg4: memref<2x8x32xf32, #tpu.memory_space<vmem>>, %arg5: memref<2x8x1xf32, #tpu.memory_space<vmem>>, %arg6: memref<2x8x1xf32, #tpu.memory_space<vmem>>, %arg7: memref<2x8x32xf32, #tpu.memory_space<vmem>>) attributes {dimension_semantics = [#tpu.dimension_semantics<parallel>, #tpu.dimension_semantics<arbitrary>], iteration_bounds = array<i64: 2, 1>, scalar_prefetch = 0 : i64, scratch_operands = 3 : i64, tpu.core_type = #tpu.core_type<tc>, window_params = [{transform_indices = @transform_0, window_bounds = array<i64: 2, 8, 32>}, {transform_indices = @transform_1, window_bounds = array<i64: 2, 32, 256>}, {transform_indices = @transform_2, window_bounds = array<i64: 2, 8, 32>}]} {
    %c0_i32 = arith.constant 0 : i32
    %0 = arith.cmpi eq, %arg1, %c0_i32 : i32
    %1 = arith.extui %0 : i1 to i32
    %c0_i32_0 = arith.constant 0 : i32
    %2 = arith.cmpi ne, %1, %c0_i32_0 : i32
    scf.if %2 {
      %cst_58 = arith.constant 0xFF800000 : f32
      %84 = vector.broadcast %cst_58 : f32 to vector<2x8x1xf32>
      %c0_59 = arith.constant 0 : index
      %c0_60 = arith.constant 0 : index
      %c0_61 = arith.constant 0 : index
      %85 = vector.load %arg5[%c0_59, %c0_60, %c0_61] : memref<2x8x1xf32, #tpu.memory_space<vmem>>, vector<2x8x1xf32>
      tpu.vector_store %arg5[%c0_59, %c0_60, %c0_61], %84 {strides = array<i32>} : memref<2x8x1xf32, #tpu.memory_space<vmem>>, vector<2x8x1xf32>,
      %cst_62 = arith.constant 0.000000e+00 : f32
      %86 = vector.broadcast %cst_62 : f32 to vector<2x8x1xf32>
      %c0_63 = arith.constant 0 : index
      %c0_64 = arith.constant 0 : index
      %c0_65 = arith.constant 0 : index
      %87 = vector.load %arg6[%c0_63, %c0_64, %c0_65] : memref<2x8x1xf32, #tpu.memory_space<vmem>>, vector<2x8x1xf32>
      tpu.vector_store %arg6[%c0_63, %c0_64, %c0_65], %86 {strides = array<i32>} : memref<2x8x1xf32, #tpu.memory_space<vmem>>, vector<2x8x1xf32>,
      %cst_66 = arith.constant 0.000000e+00 : f32
      %88 = vector.broadcast %cst_66 : f32 to vector<2x8x32xf32>
      %c0_67 = arith.constant 0 : index
      %c0_68 = arith.constant 0 : index
      %c0_69 = arith.constant 0 : index
      %89 = vector.load %arg7[%c0_67, %c0_68, %c0_69] : memref<2x8x32xf32, #tpu.memory_space<vmem>>, vector<2x8x32xf32>
      tpu.vector_store %arg7[%c0_67, %c0_68, %c0_69], %88 {strides = array<i32>} : memref<2x8x32xf32, #tpu.memory_space<vmem>>, vector<2x8x32xf32>,
    } else {
    }
    %c0 = arith.constant 0 : index
    %c0_1 = arith.constant 0 : index
    %c0_2 = arith.constant 0 : index
    %3 = vector.load %arg2[%c0, %c0_1, %c0_2] : memref<2x8x32xbf16, #tpu.memory_space<vmem>>, vector<1x8x32xbf16>
    %4 = vector.shape_cast %3 : vector<1x8x32xbf16> to vector<8x32xbf16>
    %c0_3 = arith.constant 0 : index
    %c0_4 = arith.constant 0 : index
    %c0_5 = arith.constant 0 : index
    %5 = vector.load %arg3[%c0_3, %c0_4, %c0_5] : memref<2x32x256xbf16, #tpu.memory_space<vmem>>, vector<1x32x256xbf16>
    %6 = vector.shape_cast %5 : vector<1x32x256xbf16> to vector<32x256xbf16>
    %cst = arith.constant dense<0.000000e+00> : vector<8x256xf32>
    %7 = tpu.matmul %4, %6, %cst {dimension_numbers = #tpu.dot_dimension_numbers<[1], [0], [0], [1], [0, 0, 1, 1], [], []>} : vector<8x32xbf16>, vector<32x256xbf16>, vector<8x256xf32> -> vector<8x256xf32>
    %cst_6 = arith.constant 0.176776692 : f32
    %8 = vector.broadcast %cst_6 : f32 to vector<8x256xf32>
    %9 = arith.mulf %7, %8 : vector<8x256xf32>
    %c0_7 = arith.constant 0 : index
    %c0_8 = arith.constant 0 : index
    %c0_9 = arith.constant 0 : index
    %10 = vector.load %arg5[%c0_7, %c0_8, %c0_9] : memref<2x8x1xf32, #tpu.memory_space<vmem>>, vector<1x8x1xf32>
    %11 = vector.shape_cast %10 : vector<1x8x1xf32> to vector<8x1xf32>
    %cst_10 = arith.constant dense<0xFF800000> : vector<8xf32>
    %12 = vector.multi_reduction <maximumf>, %9, %cst_10 [1] : vector<8x256xf32> to vector<8xf32>
    %13 = vector.shape_cast %12 : vector<8xf32> to vector<8x1xf32>
    %14 = arith.maximumf %11, %13 : vector<8x1xf32>
    %15 = arith.subf %11, %14 : vector<8x1xf32>
    %16 = math.exp %15 : vector<8x1xf32>
    %17 = vector.broadcast %14 : vector<8x1xf32> to vector<8x256xf32>
    %18 = arith.subf %9, %17 : vector<8x256xf32>
    %19 = math.exp %18 : vector<8x256xf32>
    %c0_11 = arith.constant 0 : index
    %c0_12 = arith.constant 0 : index
    %c0_13 = arith.constant 0 : index
    %20 = vector.load %arg6[%c0_11, %c0_12, %c0_13] : memref<2x8x1xf32, #tpu.memory_space<vmem>>, vector<1x8x1xf32>
    %21 = vector.shape_cast %20 : vector<1x8x1xf32> to vector<8x1xf32>
    %22 = arith.mulf %16, %21 : vector<8x1xf32>
    %cst_14 = arith.constant dense<0.000000e+00> : vector<8xf32>
    %23 = vector.multi_reduction <add>, %19, %cst_14 [1] : vector<8x256xf32> to vector<8xf32>
    %24 = vector.shape_cast %23 : vector<8xf32> to vector<8x1xf32>
    %25 = arith.addf %22, %24 : vector<8x1xf32>
    %c0_15 = arith.constant 0 : index
    %c0_16 = arith.constant 0 : index
    %c0_17 = arith.constant 0 : index
    %26 = vector.load %arg6[%c0_15, %c0_16, %c0_17] : memref<2x8x1xf32, #tpu.memory_space<vmem>>, vector<1x8x1xf32>
    %27 = vector.shape_cast %26 : vector<1x8x1xf32> to vector<8x1xf32>
    %28 = vector.shape_cast %25 : vector<8x1xf32> to vector<1x8x1xf32>
    tpu.vector_store %arg6[%c0_15, %c0_16, %c0_17], %28 {strides = array<i32>} : memref<2x8x1xf32, #tpu.memory_space<vmem>>, vector<1x8x1xf32>,
    %29 = arith.truncf %19 : vector<8x256xf32> to vector<8x256xbf16>
    %cst_18 = arith.constant dense<0.000000e+00> : vector<8x32xf32>
    %30 = tpu.matmul %29, %6, %cst_18 {dimension_numbers = #tpu.dot_dimension_numbers<[1], [1], [0], [0], [0, 0, 1, 0], [], []>} : vector<8x256xbf16>, vector<32x256xbf16>, vector<8x32xf32> -> vector<8x32xf32>
    %c0_19 = arith.constant 0 : index
    %c0_20 = arith.constant 0 : index
    %c0_21 = arith.constant 0 : index
    %31 = vector.load %arg7[%c0_19, %c0_20, %c0_21] : memref<2x8x32xf32, #tpu.memory_space<vmem>>, vector<1x8x32xf32>
    %32 = vector.shape_cast %31 : vector<1x8x32xf32> to vector<8x32xf32>
    %33 = vector.broadcast %16 : vector<8x1xf32> to vector<8x32xf32>
    %34 = arith.mulf %33, %32 : vector<8x32xf32>
    %35 = arith.addf %34, %30 : vector<8x32xf32>
    %c0_22 = arith.constant 0 : index
    %c0_23 = arith.constant 0 : index
    %c0_24 = arith.constant 0 : index
    %36 = vector.load %arg7[%c0_22, %c0_23, %c0_24] : memref<2x8x32xf32, #tpu.memory_space<vmem>>, vector<1x8x32xf32>
    %37 = vector.shape_cast %36 : vector<1x8x32xf32> to vector<8x32xf32>
    %38 = vector.shape_cast %35 : vector<8x32xf32> to vector<1x8x32xf32>
    tpu.vector_store %arg7[%c0_22, %c0_23, %c0_24], %38 {strides = array<i32>} : memref<2x8x32xf32, #tpu.memory_space<vmem>>, vector<1x8x32xf32>,
    %c0_25 = arith.constant 0 : index
    %c0_26 = arith.constant 0 : index
    %c0_27 = arith.constant 0 : index
    %39 = vector.load %arg5[%c0_25, %c0_26, %c0_27] : memref<2x8x1xf32, #tpu.memory_space<vmem>>, vector<1x8x1xf32>
    %40 = vector.shape_cast %39 : vector<1x8x1xf32> to vector<8x1xf32>
    %41 = vector.shape_cast %14 : vector<8x1xf32> to vector<1x8x1xf32>
    tpu.vector_store %arg5[%c0_25, %c0_26, %c0_27], %41 {strides = array<i32>} : memref<2x8x1xf32, #tpu.memory_space<vmem>>, vector<1x8x1xf32>,
    %c1 = arith.constant 1 : index
    %c0_28 = arith.constant 0 : index
    %c0_29 = arith.constant 0 : index
    %42 = vector.load %arg2[%c1, %c0_28, %c0_29] : memref<2x8x32xbf16, #tpu.memory_space<vmem>>, vector<1x8x32xbf16>
    %43 = vector.shape_cast %42 : vector<1x8x32xbf16> to vector<8x32xbf16>
    %c1_30 = arith.constant 1 : index
    %c0_31 = arith.constant 0 : index
    %c0_32 = arith.constant 0 : index
    %44 = vector.load %arg3[%c1_30, %c0_31, %c0_32] : memref<2x32x256xbf16, #tpu.memory_space<vmem>>, vector<1x32x256xbf16>
    %45 = vector.shape_cast %44 : vector<1x32x256xbf16> to vector<32x256xbf16>
    %cst_33 = arith.constant dense<0.000000e+00> : vector<8x256xf32>
    %46 = tpu.matmul %43, %45, %cst_33 {dimension_numbers = #tpu.dot_dimension_numbers<[1], [0], [0], [1], [0, 0, 1, 1], [], []>} : vector<8x32xbf16>, vector<32x256xbf16>, vector<8x256xf32> -> vector<8x256xf32>
    %cst_34 = arith.constant 0.176776692 : f32
    %47 = vector.broadcast %cst_34 : f32 to vector<8x256xf32>
    %48 = arith.mulf %46, %47 : vector<8x256xf32>
    %c1_35 = arith.constant 1 : index
    %c0_36 = arith.constant 0 : index
    %c0_37 = arith.constant 0 : index
    %49 = vector.load %arg5[%c1_35, %c0_36, %c0_37] : memref<2x8x1xf32, #tpu.memory_space<vmem>>, vector<1x8x1xf32>
    %50 = vector.shape_cast %49 : vector<1x8x1xf32> to vector<8x1xf32>
    %cst_38 = arith.constant dense<0xFF800000> : vector<8xf32>
    %51 = vector.multi_reduction <maximumf>, %48, %cst_38 [1] : vector<8x256xf32> to vector<8xf32>
    %52 = vector.shape_cast %51 : vector<8xf32> to vector<8x1xf32>
    %53 = arith.maximumf %50, %52 : vector<8x1xf32>
    %54 = arith.subf %50, %53 : vector<8x1xf32>
    %55 = math.exp %54 : vector<8x1xf32>
    %56 = vector.broadcast %53 : vector<8x1xf32> to vector<8x256xf32>
    %57 = arith.subf %48, %56 : vector<8x256xf32>
    %58 = math.exp %57 : vector<8x256xf32>
    %c1_39 = arith.constant 1 : index
    %c0_40 = arith.constant 0 : index
    %c0_41 = arith.constant 0 : index
    %59 = vector.load %arg6[%c1_39, %c0_40, %c0_41] : memref<2x8x1xf32, #tpu.memory_space<vmem>>, vector<1x8x1xf32>
    %60 = vector.shape_cast %59 : vector<1x8x1xf32> to vector<8x1xf32>
    %61 = arith.mulf %55, %60 : vector<8x1xf32>
    %cst_42 = arith.constant dense<0.000000e+00> : vector<8xf32>
    %62 = vector.multi_reduction <add>, %58, %cst_42 [1] : vector<8x256xf32> to vector<8xf32>
    %63 = vector.shape_cast %62 : vector<8xf32> to vector<8x1xf32>
    %64 = arith.addf %61, %63 : vector<8x1xf32>
    %c1_43 = arith.constant 1 : index
    %c0_44 = arith.constant 0 : index
    %c0_45 = arith.constant 0 : index
    %65 = vector.load %arg6[%c1_43, %c0_44, %c0_45] : memref<2x8x1xf32, #tpu.memory_space<vmem>>, vector<1x8x1xf32>
    %66 = vector.shape_cast %65 : vector<1x8x1xf32> to vector<8x1xf32>
    %67 = vector.shape_cast %64 : vector<8x1xf32> to vector<1x8x1xf32>
    tpu.vector_store %arg6[%c1_43, %c0_44, %c0_45], %67 {strides = array<i32>} : memref<2x8x1xf32, #tpu.memory_space<vmem>>, vector<1x8x1xf32>,
    %68 = arith.truncf %58 : vector<8x256xf32> to vector<8x256xbf16>
    %cst_46 = arith.constant dense<0.000000e+00> : vector<8x32xf32>
    %69 = tpu.matmul %68, %45, %cst_46 {dimension_numbers = #tpu.dot_dimension_numbers<[1], [1], [0], [0], [0, 0, 1, 0], [], []>} : vector<8x256xbf16>, vector<32x256xbf16>, vector<8x32xf32> -> vector<8x32xf32>
    %c1_47 = arith.constant 1 : index
    %c0_48 = arith.constant 0 : index
    %c0_49 = arith.constant 0 : index
    %70 = vector.load %arg7[%c1_47, %c0_48, %c0_49] : memref<2x8x32xf32, #tpu.memory_space<vmem>>, vector<1x8x32xf32>
    %71 = vector.shape_cast %70 : vector<1x8x32xf32> to vector<8x32xf32>
    %72 = vector.broadcast %55 : vector<8x1xf32> to vector<8x32xf32>
    %73 = arith.mulf %72, %71 : vector<8x32xf32>
    %74 = arith.addf %73, %69 : vector<8x32xf32>
    %c1_50 = arith.constant 1 : index
    %c0_51 = arith.constant 0 : index
    %c0_52 = arith.constant 0 : index
    %75 = vector.load %arg7[%c1_50, %c0_51, %c0_52] : memref<2x8x32xf32, #tpu.memory_space<vmem>>, vector<1x8x32xf32>
    %76 = vector.shape_cast %75 : vector<1x8x32xf32> to vector<8x32xf32>
    %77 = vector.shape_cast %74 : vector<8x32xf32> to vector<1x8x32xf32>
    tpu.vector_store %arg7[%c1_50, %c0_51, %c0_52], %77 {strides = array<i32>} : memref<2x8x32xf32, #tpu.memory_space<vmem>>, vector<1x8x32xf32>,
    %c1_53 = arith.constant 1 : index
    %c0_54 = arith.constant 0 : index
    %c0_55 = arith.constant 0 : index
    %78 = vector.load %arg5[%c1_53, %c0_54, %c0_55] : memref<2x8x1xf32, #tpu.memory_space<vmem>>, vector<1x8x1xf32>
    %79 = vector.shape_cast %78 : vector<1x8x1xf32> to vector<8x1xf32>
    %80 = vector.shape_cast %53 : vector<8x1xf32> to vector<1x8x1xf32>
    tpu.vector_store %arg5[%c1_53, %c0_54, %c0_55], %80 {strides = array<i32>} : memref<2x8x1xf32, #tpu.memory_space<vmem>>, vector<1x8x1xf32>,
    %c0_i32_56 = arith.constant 0 : i32
    %81 = arith.cmpi eq, %arg1, %c0_i32_56 : i32
    %82 = arith.extui %81 : i1 to i32
    %c0_i32_57 = arith.constant 0 : i32
    %83 = arith.cmpi ne, %82, %c0_i32_57 : i32
    scf.if %83 {
      %c0_58 = arith.constant 0 : index
      %c0_59 = arith.constant 0 : index
      %c0_60 = arith.constant 0 : index
      %84 = vector.load %arg6[%c0_58, %c0_59, %c0_60] : memref<2x8x1xf32, #tpu.memory_space<vmem>>, vector<2x8x1xf32>
      %85 = tpu.reciprocal %84 {approx = true} : vector<2x8x1xf32> -> vector<2x8x1xf32>
      %c0_61 = arith.constant 0 : index
      %c0_62 = arith.constant 0 : index
      %c0_63 = arith.constant 0 : index
      %86 = vector.load %arg7[%c0_61, %c0_62, %c0_63] : memref<2x8x32xf32, #tpu.memory_space<vmem>>, vector<2x8x32xf32>
      %87 = vector.broadcast %85 : vector<2x8x1xf32> to vector<2x8x32xf32>
      %88 = arith.mulf %86, %87 : vector<2x8x32xf32>
      %c0_64 = arith.constant 0 : index
      %c0_65 = arith.constant 0 : index
      %c0_66 = arith.constant 0 : index
      %89 = vector.load %arg4[%c0_64, %c0_65, %c0_66] : memref<2x8x32xf32, #tpu.memory_space<vmem>>, vector<2x8x32xf32>
      tpu.vector_store %arg4[%c0_64, %c0_65, %c0_66], %88 {strides = array<i32>} : memref<2x8x32xf32, #tpu.memory_space<vmem>>, vector<2x8x32xf32>,
    } else {
    }
    return
  }
  func.func @transform_0(%arg0: i32, %arg1: i32) -> (i32, i32, i32) {
    %c0_i32 = arith.constant 0 : i32
    %c0_i32_0 = arith.constant 0 : i32
    %c0_i32_1 = arith.constant 0 : i32
    return %arg0, %c0_i32, %c0_i32_0 : i32, i32, i32
  }
  func.func @transform_1(%arg0: i32, %arg1: i32) -> (i32, i32, i32) {
    %c0_i32 = arith.constant 0 : i32
    %c0_i32_0 = arith.constant 0 : i32
    return %arg0, %c0_i32, %arg1 : i32, i32, i32
  }
  func.func @transform_2(%arg0: i32, %arg1: i32) -> (i32, i32, i32) {
    %c0_i32 = arith.constant 0 : i32
    %c0_i32_0 = arith.constant 0 : i32
    %c0_i32_1 = arith.constant 0 : i32
    return %arg0, %c0_i32, %c0_i32_0 : i32, i32, i32
  }
}

</mosaic_0001>

<bundles_post_ra>
// kernel: tpu_custom_call.1
= control target key start
LH: loop header
LB: loop body
LE: loop exit
PB: predicated region body
PF: predicated region fallthrough
CT: control target
= control target key end

     0   :  { %7 = vsyncpa [#allocation6], 0  ;;  %s1251_s0 = inlined_call_operand.hbm [shape: bf16[4,8,32], index: 0, kind: input, shape index: {}]   ;;  %s1252_s1 = inlined_call_operand.hbm [shape: bf16[4,32,256], index: 1, kind: input, shape index: {}]   ;;  %s1253_s2 = inlined_call_operand.hbm [shape: f32[4,8,32], index: 2, kind: output, shape index: {}]  }
   0x1   :  { %9 = vsyncpa [#allocation6 + $0x1], 0 }
   0x2   :  { %10 = vsyncpa [#allocation9], 0 }
   0x3   :  { %12 = vsyncpa [#allocation9 + $0x1], 0 }
   0x4   :  { %13 = vsyncpa [#allocation7], 0 }
   0x5   :  { %15 = vsyncpa [#allocation7 + $0x1], 0  ;;  %s1005_s9 = smov 0   ;;  %s1007_s10 = smov 0  }
   0x6   :  { %s1009_s11 = smov 0   ;;  %s1011_s12 = smov 0  }
   0x7   :  { %s1013_s13 = smov 0   ;;  %s1015_s14 = smov 0  }
   0x8 LB: > { %s685_s15 = sadd.s32 4294967295, %s976_s14   ;;  %s686_s16 = sadd.s32 4294967294, %s976_s14   ;;  %s976_s14 = sphi %s1015_s14, %s21_s14   ;;  %s972_s13 = sphi %s1013_s13, %s1271_s13   ;;  %s968_s12 = sphi %s1011_s12, %s1270_s12   ;;  %s964_s11 = sphi %s1009_s11, %s1269_s11   ;;  %s960_s10 = sphi %s1007_s10, %s1268_s10   ;;  %s956_s9 = sphi %s1005_s9, %s1267_s9  }
   0x9   : > { %s33_s17 = sadd.s32 1, %s972_s13  ;;  %s40_s18 = sadd.s32 1, %s964_s11 }
   0xa   : > { %p35_p0 = scmp.ge.s32.totalorder %s33_s17, 2  ;;  %p47_p1 = scmp.ne.s32.totalorder %s964_s11, %s960_s10 }
   0xb   : > { %p48_p2 = scmp.eq.s32.totalorder %s976_s14, 0  ;;  %p53_p3 = scmp.ne.s32.totalorder %s960_s10, %s956_s9 }
   0xc   : > { %s1273_s17 = smov (%p35_p0, %s33_s17), 0  ;;  %p54_p5 = scmp.eq.s32.totalorder %s685_s15, 0 }
   0xd   : > { %p1046_p4 = por %p48_p2, %p47_p1  ;;  %s37_s20 = ssub.s32 %s972_s13, %s1273_s17 }
   0xe   : > { %p105_p6 = scmp.eq.s32.totalorder %s685_s15, 1  ;;  %p38_p7 = scmp.eq.s32.totalorder %s37_s20, 0 }
   0xf   : > { %p1052_p8 = por %p54_p5, %p53_p3  ;;  %p111_p10 = scmp.eq.s32.totalorder %s686_s16, 1 }
  0x10   : > { %p1056_p9 = por %p105_p6, %p47_p1  ;;  %p741_p13 = scmp.lt.s32.totalorder %s976_s14, 2 }
  0x11   : > { %s1257_s21 = scalar_select %p1052_p8, 1, 0 }
  0x12   : > { %s1258_s22 = scalar_select %p1056_p9, 1, 0 }
  0x13   : > { %s1061_s23 = scalar_select %p38_p7, %s964_s11, %s40_s18  }
  0x14   : > { %p1063_p11 = por %p111_p10, %p53_p3  ;;  %s1070_s25 = sand.u32 1, %s964_s11  }
  0x15   : > { %s689_s26 = sshll.u32 %s1070_s25, 3  ;;  %s720_s27 = sshll.u32 %s972_s13, 7 }
  0x16   : > { %s1259_s24 = scalar_select %p1063_p11, 1, 0 }
  0x17   : > { %s1077_s30 = scalar_lea.hbm %s1251_s0, %s720_s27  ;;  %s135_s3 = scalar_lea.vmem [#allocation5], %s689_s26 }
  0x18   : > { %s142_s4 = sshll.u32 %s135_s3, 4  ;;  %p1083_p0 = pnand %p741_p13, %p1046_p4  ;;  %s1079_s4 = int_to_ptr.vmem [resolvable:$true] %s142_s4 }
  0x19   : > { %s132_s6 = scalar_lea.sflag [#allocation6], %s1070_s25  ;;  %s830_s7 = scalar_lea.hbm %s1077_s30, 128 }
  0x1a   : > { %p831_p2 = scmp.ne.s32.totalorder %s1077_s30, %s830_s7  ;;  %p832_p3 = pneg %p1083_p0 }
  0x1b   : > { %s835_s16 = scalar_lea.hbm %s1251_s0, 256  ;;  %p836_p4 = scmp.lt.u32.totalorder %s1077_s30, %s1251_s0 }
  0x1c   : > { %p833_p5 = pnand %p832_p3, %p831_p2  ;;  %p837_p7 = scmp.lt.u32.totalorder %s835_s16, %s830_s7 }
  0x1d   : > { %p839_p13 = scmp.lt.u32.totalorder %s830_s7, %s1077_s30 }
  0x1e   : > { %p834_p6 = pneg %p833_p5  ;;  %p838_p10 = por %p837_p7, %p836_p4 }
  0x20   : > { %p840_p12 = por %p839_p13, %p838_p10 }
  0x22   : > { %p841_p1 = pnand %p840_p12, %p834_p6 }
  0x24   : > { %844 = shalt.err (!%p841_p1)
}
  0x25   : > { %s845_s20 = scalar_lea.vmem %s1079_s4, 128  ;;  %s978_s26 = smov [#allocation5]  }
  0x26   : > { %p846_p2 = scmp.ne.s32.totalorder %s1079_s4, %s845_s20  ;;  %s850_s27 = sshll.u32 %s978_s26, 4  ;;  %s851_s27 = int_to_ptr.vmem [resolvable:$false] %s850_s27 }
  0x27   : > { %s852_s28 = scalar_lea.vmem %s851_s27, 256  ;;  %p853_p9 = scmp.lt.s32.totalorder %s1079_s4, %s851_s27 }
  0x28   : > { %p848_p5 = pnand %p846_p2, %p832_p3  ;;  %p854_p4 = scmp.lt.s32.totalorder %s852_s28, %s845_s20 }
  0x2a   : > { %p849_p11 = pneg %p848_p5  ;;  %p855_p7 = por %p854_p4, %p853_p9 }
  0x2c   : > { %p856_p10 = pnand %p855_p7, %p849_p11 }
  0x2e   : > { %859 = shalt.err (!%p856_p10)
}
  0x2f   : > { %s979_s29 = smov 64   ;;  %s980_s3 = smov 4  }
  0x30   : > { %733 = dma.hbm_to_vmem [thread:$0]  (!%p1083_p0), %s1077_s30, 128, %s1079_s4, %s132_s6, %s979_s29, %s979_s29, %s980_s3  }
  0x31   : > { %p174_p12 = scmp.lt.s32.totalorder %s976_s14, 3  ;;  %s692_s7 = sshll.u32 %s1070_s25, 6 }
  0x32   : > { %s722_s8 = sshll.u32 %s972_s13, 10  ;;  %p1261_p9 = scmp.ge.s32.totalorder %s976_s14, 1 }
  0x33   : > { %s1128_s19 = scalar_lea.hbm %s1252_s1, %s722_s8  ;;  %s156_s20 = scalar_lea.vmem [#allocation8], %s692_s7 }
  0x34   : > { %p1121_p11 = pnand %p1261_p9, %p174_p12  ;;  %s166_s26 = sshll.u32 %s156_s20, 4  ;;  %s1130_s26 = int_to_ptr.vmem [resolvable:$true] %s166_s26 }
  0x35   : > { %s153_s30 = scalar_lea.sflag [#allocation9], %s1070_s25  ;;  %s860_s4 = scalar_lea.hbm %s1128_s19, 1024 }
  0x36   : > { %p861_p1 = scmp.ne.s32.totalorder %s1128_s19, %s860_s4  ;;  %s865_s28 = scalar_lea.hbm %s1252_s1, 2048 }
  0x37   : > { %p866_p2 = scmp.lt.u32.totalorder %s1128_s19, %s1252_s1  ;;  %p867_p5 = scmp.lt.u32.totalorder %s865_s28, %s860_s4 }
  0x38   : > { %p863_p6 = pnand %p861_p1, %p832_p3  ;;  %p869_p7 = scmp.lt.u32.totalorder %s860_s4, %s1128_s19 }
  0x39   : > { %p868_p4 = por %p867_p5, %p866_p2 }
  0x3a   : > { %p864_p13 = pneg %p863_p6 }
  0x3b   : > { %p870_p10 = por %p869_p7, %p868_p4 }
  0x3d   : > { %p871_p12 = pnand %p870_p10, %p864_p13 }
  0x3f   : > { %874 = shalt.err (!%p871_p12)
}
  0x40   : > { %s875_s7 = scalar_lea.vmem %s1130_s26, 1024  ;;  %s981_s8 = smov [#allocation8]  }
  0x41   : > { %p876_p9 = scmp.ne.s32.totalorder %s1130_s26, %s875_s7  ;;  %s880_s16 = sshll.u32 %s981_s8, 4  ;;  %s881_s16 = int_to_ptr.vmem [resolvable:$false] %s880_s16 }
  0x42   : > { %s882_s18 = scalar_lea.vmem %s881_s16, 2048  ;;  %p883_p8 = scmp.lt.s32.totalorder %s1130_s26, %s881_s16 }
  0x43   : > { %p878_p1 = pnand %p876_p9, %p832_p3  ;;  %p884_p2 = scmp.lt.s32.totalorder %s882_s18, %s875_s7 }
  0x45   : > { %p879_p6 = pneg %p878_p1  ;;  %p885_p5 = por %p884_p2, %p883_p8 }
  0x47   : > { %p886_p4 = pnand %p885_p5, %p879_p6 }
  0x49   : > { %889 = shalt.err (!%p886_p4)
}
  0x4a   : > { %s982_s20 = smov 128   ;;  %s983_s4 = smov 8  }
  0x4b   : > { %736 = dma.hbm_to_vmem [thread:$0]  (!%p1083_p0), %s1128_s19, 1024, %s1130_s26, %s153_s30, %s982_s20, %s982_s20, %s983_s4  }
  0x4c   : > { %178 = sbr.rel (%p1121_p11) target bundleno = 917 (0x395), region = 28  ;;  %s1161_s6 = sand.u32 (!%p1121_p11), 1, %s960_s10  }
  0x4d   : > { %s697_s27 = sshll.u32 (!%p1121_p11), %s1161_s6, 3  ;;  %s181_s28 = scalar_lea.sflag (!%p1121_p11), [#allocation6], %s1161_s6 }
  0x4e   : > { %s1165_s29 = scalar_lea.vmem (!%p1121_p11), [#allocation5], %s697_s27  ;;  %p1263_p8 = scmp.ne.s32.totalorder (!%p1121_p11), %s1257_s21, 0 }
  0x53   : > { %943 = dma.done.wait (%p1263_p8), %s181_s28, 128  }
  0x54   : > { %945 = vsyncadd (%p1263_p8), %s181_s28, 4294967168  ;;  %s698_s25 = sshll.u32 %s1161_s6, 6  ;;  %s190_s5 = scalar_lea.sflag [#allocation9], %s1161_s6 }
  0x55   : > { %s193_s15 = scalar_lea.vmem [#allocation8], %s698_s25 }
  0x56   : > { %947 = dma.done.wait (%p1263_p8), %s190_s5, 1024  }
  0x57   : > { %949 = vsyncadd (%p1263_p8), %s190_s5, 4294966272  ;;  %v984_v0 = vmov 0   ;;  %v802_v1 = vld [vmem:[%s193_s15 + $0x4] ss:$8 sps:$4 sm:$0xff]   ;;  %v804_v2 = vld [vmem:[%s193_s15] ss:$8 sps:$4 sm:$0xff]  }
  0x58   : > { %297 = vmatprep.mubr.bf16.mxu1 %v984_v0  ;;  %449 = vmatprep.mubr.bf16.mxu0 %v984_v0  ;;  %v805_v3 = vld [vmem:[%s193_s15 + $0x24] ss:$8 sps:$4 sm:$0xff]   ;;  %v807_v4 = vld [vmem:[%s193_s15 + $0x20] ss:$8 sps:$4 sm:$0xff]   ;;  %v808_v5 = vld [vmem:[%s193_s15 + $0x14] ss:$8 sps:$4 sm:$0xff]  }
  0x59   : > { %800 = vset.pattern.permute.xlu1 %v984_v0  ;;  %801 = vset.pattern.permute.xlu0 %v984_v0  ;;  %v810_v6 = vld [vmem:[%s193_s15 + $0x10] ss:$8 sps:$4 sm:$0xff]   ;;  %v811_v7 = vld [vmem:[%s193_s15 + $0x34] ss:$8 sps:$4 sm:$0xff]   ;;  %vm233_vm0 = vcmask 261120   ;;  %vm228_vm1 = vcmask 7168  }
  0x5a   : > { %265 = vmatprep.subr.bf16.mxu1 %v802_v1  ;;  %417 = vmatprep.subr.bf16.mxu0 %v805_v3  ;;  %v813_v8 = vld [vmem:[%s193_s15 + $0x30] ss:$8 sps:$4 sm:$0xff]   ;;  %v705_v10 = vld [vmem:[%s1165_s29 + $0x4] sm:$0xf]  ;;  %v985_v11 = vmov -inf   ;;  %v986_v26 = vmov 0.0  }
  0x5b   : > { %266 = vmatpush1.bf16.msra.mxu1 %v804_v2  ;;  %418 = vmatpush1.bf16.msra.mxu0 %v807_v4  ;;  %v236_v9 = vld [vmem:[%s1165_s29] sm:$0xf]  ;;  %229 = vst.msk [vmem:[#allocation2] sm:$0xff] %vm228_vm1, %v985_v11  ;;  %230 = vst.msk [vmem:[#allocation2 + $0x8] sm:$0xff] %vm228_vm1, %v985_v11  ;;  %s699_s21 = sshll.u32 %s1161_s6, 4  ;;  %s723_s30 = sshll.u32 %s968_s12, 8 }
  0x5c   : > { %267 = vmatprep.subr.bf16.mxu1 %v808_v5  ;;  %419 = vmatprep.subr.bf16.mxu0 %v811_v7  ;;  %231 = vst.msk [vmem:[#allocation3] sm:$0xff] %vm228_vm1, %v986_v26  ;;  %232 = vst.msk [vmem:[#allocation3 + $0x8] sm:$0xff] %vm228_vm1, %v986_v26  ;;  %s218_s19 = scalar_lea.vmem [#allocation10], %s699_s21  ;;  %s1201_s8 = scalar_lea.hbm %s1253_s2, %s723_s30 }
  0x5d   : > { %234 = vst.msk [vmem:[#allocation4] sm:$0xff] %vm233_vm0, %v986_v26  ;;  %235 = vst.msk [vmem:[#allocation4 + $0x8] sm:$0xff] %vm233_vm0, %v986_v26  ;;  %s578_s26 = sshll.u32 %s218_s19, 4  ;;  %s565_s16 = scalar_lea.sflag [#allocation7], %s1161_s6  ;;  %s1195_s26 = int_to_ptr.vmem [resolvable:$true] %s578_s26 }
  0x5e   : > { %s890_s18 = scalar_lea.vmem %s1195_s26, 256  ;;  %p1264_p3 = scmp.ne.s32.totalorder %s1258_s22, 0 }
  0x5f   : > { %268 = vmatpush1.bf16.msra.mxu1 %v810_v6  ;;  %420 = vmatpush1.bf16.msra.mxu0 %v813_v8  ;;  %p891_p0 = scmp.ne.s32.totalorder %s1195_s26, %s890_s18  ;;  %s987_s12 = smov [#allocation10]  }
  0x60   : > { %337 = vmatprep.subr.bf16.mxu1 %v802_v1  ;;  %490 = vmatprep.subr.bf16.mxu0 %v805_v3  ;;  %s894_s20 = sshll.u32 %s987_s12, 4  ;;  %s895_s20 = int_to_ptr.vmem [resolvable:$false] %s894_s20 }
  0x61   : > { %p892_p11 = pnand %p891_p0, %p1264_p3  ;;  %s896_s4 = scalar_lea.vmem %s895_s20, 512 }
  0x62   : > { %704 = vmatmul.mubr.msk.bf16.vlgmr.msra.gmra.mrb[0].mxu1 %vm233_vm0, %v236_v9  ;;  %714 = vmatmul.mubr.msk.bf16.vlgmr.msra.gmra.mrb[0].mxu0 %vm233_vm0, %v705_v10  ;;  %v308_v27 = vld [vmem:[#allocation2] sm:$0xff]  ;;  %v461_v30 = vld [vmem:[#allocation2 + $0x8] sm:$0xff]  ;;  %p897_p7 = scmp.lt.s32.totalorder %s1195_s26, %s895_s20  ;;  %p898_p10 = scmp.lt.s32.totalorder %s896_s4, %s890_s18 }
  0x63   : > { %v327_v59 = vld [vmem:[#allocation3] sm:$0xff]  ;;  %v481_v62 = vld [vmem:[#allocation3 + $0x8] sm:$0xff]  ;;  %p893_p13 = pneg %p892_p11 }
  0x64   : > { %v531_v10 = vld [vmem:[#allocation4 + $0x8] sm:$0xff]  ;;  %p899_p12 = por %p898_p10, %p897_p7 }
  0x66   : > { %p900_p9 = pnand %p899_p12, %p893_p13 }
  0x68   : > { %338 = vmatpush1.bf16.xpose.msra.mxu1 %v804_v2  ;;  %491 = vmatpush1.bf16.xpose.msra.mxu0 %v807_v4 }
  0x69   : > { %339 = vmatprep.subr.bf16.mxu1 %v808_v5  ;;  %492 = vmatprep.subr.bf16.mxu0 %v811_v7  ;;  %v377_v7 = vld [vmem:[#allocation4] sm:$0xff] }
  0x70   : > { %340 = vmatpush1.bf16.xpose.msra.mxu1 %v810_v6  ;;  %493 = vmatpush1.bf16.xpose.msra.mxu0 %v813_v8 }
 0x135   : > { %v299_v12 = vpop.f32.mrb[0].mxu1  ;;  %v451_v16 = vpop.f32.mrb[0].mxu0 }
 0x136   : > { %v306_v13 = vmul.f32 0.17677669, %v299_v12  ;;  %v301_v14 = vpop.f32.mrb[1].mxu1  ;;  %v458_v18 = vmul.f32 0.17677669, %v451_v16  ;;  %v453_v19 = vpop.f32.mrb[1].mxu0 }
 0x137   : > { %v307_v15 = vmul.f32 0.17677669, %v301_v14  ;;  %v303_v17 = vpop.f32.mrb[2].mxu1  ;;  %v459_v21 = vmul.f32 0.17677669, %v453_v19  ;;  %v455_v22 = vpop.f32.mrb[2].mxu0 }
 0x138   : > { %v304_v20 = vpop.f32.mrb[3].mxu1  ;;  %v456_v24 = vpop.f32.mrb[3].mxu0 }
 0x139   : > { %v309_v23 = vmax.f32 %v306_v13, %v307_v15  ;;  %v462_v25 = vmax.f32 %v458_v18, %v459_v21 }
 0x13b   : > { %310 = vmax.xlane.f32.xlu0 %v309_v23 }
 0x13f   : > { %463 = vmax.xlane.f32.xlu0 %v462_v25 }
 0x1c8   : > { %v311_v28 = vpop.xlane.xlu0 %310 }
 0x1c9   : > { %v312_v29 = vmax.f32 %v308_v27, %v311_v28 }
 0x1cb   : > { %v313_v31 = vsub.f32 %v308_v27, %v312_v29  ;;  %386 = vst.msk [vmem:[#allocation2] sm:$0xff] %vm228_vm1, %v312_v29  ;;  %318 = vperm.xlu1 %800, %v312_v29  }
 0x1cc   : > { %v464_v32 = vpop.xlane.xlu0 %463 }
 0x1cd   : > { %v465_v33 = vmax.f32 %v461_v30, %v464_v32  ;;  %v314_v56 = vmul.f32 1.442695, %v313_v31 }
 0x1cf   : > { %v466_v34 = vsub.f32 %v461_v30, %v465_v33  ;;  %540 = vst.msk [vmem:[#allocation2 + $0x8] sm:$0xff] %vm228_vm1, %v465_v33  ;;  %471 = vperm.xlu1 %800, %v465_v33  }
 0x1d1   : > { %v467_v55 = vmul.f32 1.442695, %v466_v34 }
 0x24a   : > { %v319_v35 = vpop.permute.xlu1 %318 }
 0x24b   : > { %v321_v36 = vsub.f32 %v306_v13, %v319_v35  ;;  %v322_v37 = vsub.f32 %v307_v15, %v319_v35 }
 0x24d   : > { %v323_v38 = vmul.f32 1.442695, %v321_v36  ;;  %v325_v39 = vmul.f32 1.442695, %v322_v37 }
 0x24e   : > { %v472_v40 = vpop.permute.xlu1 %471 }
 0x24f   : > { %814 = vpow2.f32 %v323_v38  ;;  %v474_v41 = vsub.f32 %v458_v18, %v472_v40  ;;  %v475_v42 = vsub.f32 %v459_v21, %v472_v40 }
 0x250   : > { %816 = vpow2.f32 %v325_v39 }
 0x251   : > { %v476_v43 = vmul.f32 1.442695, %v474_v41  ;;  %v478_v44 = vmul.f32 1.442695, %v475_v42 }
 0x253   : > { %818 = vpow2.f32 %v476_v43 }
 0x254   : > { %820 = vpow2.f32 %v478_v44 }
 0x255   : > { %822 = vpow2.f32 %v467_v55 }
 0x256   : > { %824 = vpow2.f32 %v314_v56 }
 0x259   : > { %v815_v45 = vpop.eup %814 }
 0x25a   : > { %v817_v46 = vpop.eup %816  ;;  %v335_v47 = vpack.c.bf16 %v815_v45, %v815_v45 }
 0x25b   : > { %v336_v48 = vpack.c.bf16 %v817_v46, %v817_v46  ;;  %v329_v49 = vadd.f32 %v817_v46, %v815_v45 }
 0x25d   : > { %v819_v50 = vpop.eup %818  ;;  %369 = vmatprep.mubr.bf16.mxu1 %v336_v48  ;;  %330 = vadd.xlane.f32.xlu0 %v329_v49 }
 0x25e   : > { %v821_v51 = vpop.eup %820  ;;  %370 = vmatmul.mubr.bf16.vlgmr.msra.gmra.mrb[4].mxu1 %v335_v47  ;;  %v488_v52 = vpack.c.bf16 %v819_v50, %v819_v50 }
 0x25f   : > { %v489_v53 = vpack.c.bf16 %v821_v51, %v821_v51  ;;  %v483_v54 = vadd.f32 %v821_v51, %v819_v50  ;;  %v823_v57 = vpop.eup %822 }
 0x260   : > { %v825_v58 = vpop.eup %824  ;;  %v482_v0 = vmul.f32 %v823_v57, %v481_v62 }
 0x261   : > { %522 = vmatprep.mubr.bf16.mxu0 %v489_v53  ;;  %484 = vadd.xlane.f32.xlu1 %v483_v54  ;;  %v328_v60 = vmul.f32 %v825_v58, %v327_v59 }
 0x262   : > { %523 = vmatmul.mubr.bf16.vlgmr.msra.gmra.mrb[4].mxu0 %v488_v52 }
 0x272   : > { %534 = vperm.xlu1 %800, %v823_v57  }
 0x273   : > { %380 = vperm.xlu0 %801, %v825_v58  }
 0x2ea   : > { %v331_v61 = vpop.xlane.xlu0 %330 }
 0x2eb   : > { %v332_v63 = vadd.f32 %v331_v61, %v328_v60 }
 0x2ed   : > { %334 = vst.msk [vmem:[#allocation3] sm:$0xff] %vm228_vm1, %v332_v63 }
 0x2ee   : > { %v485_v1 = vpop.xlane.xlu1 %484 }
 0x2ef   : > { %v486_v2 = vadd.f32 %v485_v1, %v482_v0 }
 0x2f1   : > { %487 = vst.msk [vmem:[#allocation3 + $0x8] sm:$0xff] %vm228_vm1, %v486_v2 }
 0x2f2   : > { %v381_v8 = vpop.permute.xlu0 %380  ;;  %v535_v11 = vpop.permute.xlu1 %534 }
 0x2f3   : > { %v383_v9 = vmul.f32 %v381_v8, %v377_v7  ;;  %v537_v16 = vmul.f32 %v535_v11, %v531_v10 }
 0x2f4   : > { %v544_v3 = vld [vmem:[#allocation3] sm:$0xff] }
 0x2f5   : > { %826 = vrcp.f32 %v544_v3 }
 0x2f8   : > { %v545_v4 = vld [vmem:[#allocation3 + $0x8] sm:$0xff] }
 0x2f9   : > { %828 = vrcp.f32 %v545_v4 }
 0x2ff   : > { %v827_v5 = vpop.eup %826 }
 0x300   : > { %552 = vperm.xlu0 %801, %v827_v5  }
 0x303   : > { %v829_v6 = vpop.eup %828 }
 0x304   : > { %557 = vperm.xlu0 %801, %v829_v6  }
 0x331   : > { %v371_v12 = vpop.f32.mrb[4].mxu1 }
 0x332   : > { %v384_v13 = vadd.f32 %v383_v9, %v371_v12  ;;  %v373_v14 = vpop.f32.mrb[5].mxu1 }
 0x333   : > { %v374_v15 = vpop.f32.mrb[6].mxu1 }
 0x334   : > { %385 = vst.msk [vmem:[#allocation4] sm:$0xff] %vm233_vm0, %v384_v13  ;;  %v375_v17 = vpop.f32.mrb[7].mxu1 }
 0x335   : > { %v524_v18 = vpop.f32.mrb[4].mxu0 }
 0x336   : > { %v538_v19 = vadd.f32 %v537_v16, %v524_v18  ;;  %v526_v20 = vpop.f32.mrb[5].mxu0 }
 0x337   : > { %v527_v21 = vpop.f32.mrb[6].mxu0 }
 0x338   : > { %539 = vst.msk [vmem:[#allocation4 + $0x8] sm:$0xff] %vm233_vm0, %v538_v19  ;;  %v528_v22 = vpop.f32.mrb[7].mxu0 }
 0x33b   : > { %v548_v23 = vld [vmem:[#allocation4] sm:$0xff] }
 0x33f   : > { %v549_v26 = vld [vmem:[#allocation4 + $0x8] sm:$0xff] }
 0x37f   : > { %v553_v24 = vpop.permute.xlu0 %552 }
 0x380   : > { %v560_v25 = vmul.f32 %v553_v24, %v548_v23 }
 0x382   : > { %562 = vst.msk [vmem:[%s218_s19] sm:$0xff] %vm233_vm0, %v560_v25 }
 0x383   : > { %v558_v27 = vpop.permute.xlu0 %557 }
 0x384   : > { %v561_v28 = vmul.f32 %v558_v27, %v549_v26 }
 0x386   : > { %563 = vst.msk [vmem:[%s218_s19 + $0x8] sm:$0xff] %vm233_vm0, %v561_v28 }
 0x387   : > { %903 = shalt.err (!%p900_p9)
}
 0x388   : > { %s904_s27 = scalar_lea.hbm %s1201_s8, 256  ;;  %s908_s25 = scalar_lea.hbm %s1253_s2, 512 }
 0x389   : > { %p905_p1 = scmp.ne.s32.totalorder %s1201_s8, %s904_s27  ;;  %p909_p5 = scmp.lt.u32.totalorder %s1201_s8, %s1253_s2 }
 0x38a   : > { %p910_p4 = scmp.lt.u32.totalorder %s908_s25, %s904_s27  ;;  %p912_p0 = scmp.lt.u32.totalorder %s904_s27, %s1201_s8 }
 0x38b   : > { %p906_p6 = pnand %p905_p1, %p1264_p3 }
 0x38c   : > { %p911_p8 = por %p910_p4, %p909_p5 }
 0x38d   : > { %p907_p2 = pneg %p906_p6 }
 0x38e   : > { %p913_p11 = por %p912_p0, %p911_p8 }
 0x390   : > { %p914_p13 = pnand %p913_p11, %p907_p2 }
 0x392   : > { %917 = shalt.err (!%p914_p13)
}
 0x393   : > { %s988_s21 = smov 128   ;;  %s989_s19 = smov 8  }
 0x394   : > { %728 = dma.vmem_to_hbm [thread:$0]  (%p1264_p3), %s1195_s26, 256, %s1201_s8, %s565_s16, %s988_s21, %s988_s21, %s989_s19  }
 0x395 PF: > { %s593_s30 = sand.u32 1, %s956_s9   ;;  %p1265_p7 = scmp.ne.s32.totalorder %s1259_s24, 0 }
 0x396   : > { %p1266_p10 = scmp.ge.s32.totalorder %s976_s14, 2  ;;  %s594_s3 = scalar_lea.sflag [#allocation7], %s593_s30 }
 0x398   : > { %p738_p12 = pnand %p1266_p10, %p1265_p7 }
 0x39a   : > { %951 = dma.done.wait (!%p738_p12), %s594_s3, 256  }
 0x39b   : > { %953 = vsyncadd (!%p738_p12), %s594_s3, 4294967040  ;;  %s21_s14 = sadd.s32 1, %s976_s14   ;;  %s1267_s9 = smov %s960_s10 }
 0x39c   : > { %p18_p9 = scmp.ge.s32.totalorder %s21_s14, 4   ;;  %s1268_s10 = smov %s964_s11 }
 0x39d   : > { %s1269_s11 = smov %s1061_s23  ;;  %s1270_s12 = smov %s972_s13 }
 0x39e   : > { %s1271_s13 = smov %s1273_s17  ;;  %20 = sbr.rel (!%p18_p9) target bundleno = 8 (0x8), region = 99 }
 0x3a5   :  { %599 = vsyncpa [#allocation6], 1 }
 0x3a6   :  { %601 = vsyncpa [#allocation6 + $0x1], 1 }
 0x3a7   :  { %602 = vsyncpa [#allocation9], 1 }
 0x3a8   :  { %604 = vsyncpa [#allocation9 + $0x1], 1 }
 0x3a9   :  { %605 = vsyncpa [#allocation7], 1 }
 0x3aa   :  { %607 = vsyncpa [#allocation7 + $0x1], 1 }

</bundles_post_ra>
